<compile_context>
chip_gen: v7x
topology: tpu7x:2x2x1
jax: 0.10.0
libtpu: 0.0.40
codegen_flags: <defaults>
</compile_context>

<pallas_src>
import math

import jax
import jax.numpy as jnp
from jax.experimental import pallas as pl
from jax.experimental.pallas import tpu as pltpu


def _make_pe_table(T: int, d_model: int, *, max_len: int, reverse: bool = False) -> jnp.ndarray:
    """Build only the first T rows of the (max_len, d_model) sinusoidal table.

    Matches PyTorch's `extend_pe` (built over max_len) followed by `pe[:, :T]`,
    without materializing the full max_len table.
    """
    if reverse:
        # rows 0..T-1 of the reversed table correspond to positions
        # max_len-1, max_len-2, ..., max_len-T
        position = (max_len - 1) - jnp.arange(T, dtype=jnp.float32)
    else:
        position = jnp.arange(T, dtype=jnp.float32)
    position = position[:, None]                                  # (T, 1)
    div_term = jnp.exp(
        jnp.arange(0, d_model, 2, dtype=jnp.float32)
        * -(math.log(10000.0) / d_model)
    )                                                             # (d_model//2,)
    ang = position * div_term                                     # (T, d_model//2)
    pe = jnp.zeros((T, d_model), dtype=jnp.float32)
    pe = pe.at[:, 0::2].set(jnp.sin(ang))
    pe = pe.at[:, 1::2].set(jnp.cos(ang))
    return pe


def _posenc_kernel(xscale: float):
    def kernel(x_ref, pe_ref, o_ref):
        # x_ref / pe_ref / o_ref are all (tile_r, L); batch dim is squeezed.
        # FMA in f32 (pe kept f32), cast only on store.
        x = x_ref[...].astype(jnp.float32)
        o_ref[...] = (x * xscale + pe_ref[...]).astype(o_ref.dtype)
    return kernel


def positional_encoding(x: jnp.ndarray, d_model: int, max_len: int = 5000,
                        reverse: bool = False) -> jnp.ndarray:
    """PositionalEncoding forward: x * sqrt(d_model) + pe[:, :T] (eval-mode dropout)."""
    B, T, D = x.shape
    assert D == d_model, "last dim must equal d_model"
    assert T <= max_len, "sequence longer than max_len"
    xscale = float(math.sqrt(d_model))
    itemsize = jnp.dtype(x.dtype).itemsize

    pe = _make_pe_table(T, d_model, max_len=max_len, reverse=reverse)   # (T, D) f32

    # ---- choose a lane-dense 2-D per-sequence view (R, L) -------------------
    reshaped = False
    if D >= 128:
        R, L = T, D
        x_view, pe_view = x, pe
    else:
        # Small d_model: fold time*feature into rows of L = k*128 lanes so the
        # store path uses full-lane (unmasked) vector stores.
        flat = T * D
        L = 0
        for k in (8, 4, 2, 1):                 # prefer wide rows (>= 512 lanes)
            if flat % (128 * k) == 0:
                L = 128 * k
                break
        if L:
            R = flat // L
            x_view = x.reshape(B, R, L)
            pe_view = pe.reshape(R, L)
            reshaped = True
        else:
            # T*D not a multiple of 128: fall back to the direct layout
            # (correct; last block dim equals the full array dim).
            R, L = T, D
            x_view, pe_view = x, pe

    # ---- row-tile size: ~1 MiB per x block, sublane-aligned ------------------
    sub = max(8, 32 // itemsize)               # 8 (f32), 16 (bf16), 32 (int8)
    target_elems = (1 << 20) // 4              # ~1 MiB of f32 elements per block
    tile_r = max(sub, (target_elems // L) // sub * sub)
    if tile_r >= R:
        tile_r = R                             # full dim -> always a legal block
    n_rb = pl.cdiv(R, tile_r)

    # Batch innermost so the pe block stays resident across consecutive b steps.
    grid = (n_rb, B)

    cost = pl.CostEstimate(
        flops=2 * B * T * D,
        transcendentals=0,
        bytes_accessed=2 * B * T * D * itemsize + R * L * 4,
    )

    out_view = pl.pallas_call(
        _posenc_kernel(xscale),
        out_shape=jax.ShapeDtypeStruct((B, R, L), x.dtype),
        grid_spec=pltpu.PrefetchScalarGridSpec(
            num_scalar_prefetch=0,
            grid=grid,
            in_specs=[
                # x: one batch row, one row-block; batch dim squeezed away.
                pl.BlockSpec((pl.Squeezed(), tile_r, L), lambda r, b: (b, r, 0)),
                # pe: shared table; block index independent of b (no re-DMA).
                pl.BlockSpec((tile_r, L), lambda r, b: (r, 0)),
            ],
            out_specs=pl.BlockSpec((pl.Squeezed(), tile_r, L), lambda r, b: (b, r, 0)),
        ),
        compiler_params=pltpu.CompilerParams(
            dimension_semantics=("parallel", "parallel"),
        ),
        cost_estimate=cost,
    )(x_view, pe_view)

    return out_view.reshape(B, T, D) if reshaped else out_view


# ------------------------------ self test ------------------------------------
def _ref_pe_full(max_len: int, d_model: int, reverse: bool) -> jnp.ndarray:
    """Reference: build the full max_len table exactly like PyTorch extend_pe."""
    if reverse:
        position = jnp.arange(max_len - 1, -1, -1.0, dtype=jnp.float32)[:, None]
    else:
        position = jnp.arange(0, max_len, dtype=jnp.float32)[:, None]
    div_term = jnp.exp(
        jnp.arange(0, d_model, 2, dtype=jnp.float32)
        * -(math.log(10000.0) / d_model)
    )
    ang = position * div_term
    pe = jnp.zeros((max_len, d_model), dtype=jnp.float32)
    pe = pe.at[:, 0::2].set(jnp.sin(ang))
    pe = pe.at[:, 1::2].set(jnp.cos(ang))
    return pe


if __name__ == "__main__":
    # Case 1: small d_model (< 128) -> lane-dense flattened path.
    B, T, D = 2, 8, 32
    max_len = 64
    x1 = jax.random.normal(jax.random.PRNGKey(0), (B, T, D), dtype=jnp.float32)
    out1 = jax.block_until_ready(positional_encoding(x1, d_model=D, max_len=max_len))
    ref1 = x1 * math.sqrt(D) + _ref_pe_full(max_len, D, reverse=False)[:T][None]
    assert out1.shape == (B, T, D)
    assert jnp.allclose(out1, ref1, atol=1e-5, rtol=1e-5), "mismatch (small-D path)"

    # Case 2: d_model >= 128 -> direct (B, T, D) tiled path, with reverse=True.
    B2, T2, D2 = 2, 24, 256
    x2 = jax.random.normal(jax.random.PRNGKey(1), (B2, T2, D2), dtype=jnp.float32)
    out2 = jax.block_until_ready(
        positional_encoding(x2, d_model=D2, max_len=max_len, reverse=True))
    ref2 = x2 * math.sqrt(D2) + _ref_pe_full(max_len, D2, reverse=True)[:T2][None]
    assert out2.shape == (B2, T2, D2)
    assert jnp.allclose(out2, ref2, atol=1e-5, rtol=1e-5), "mismatch (large-D path)"

    print("KERNEL_OK")
</pallas_src>

<mosaic_0001>
module attributes {stable_mosaic.version = 11 : i64} {
  func.func @kernel(%arg0: i32, %arg1: i32, %arg2: memref<1x1x256xf32, #tpu.memory_space<vmem>>, %arg3: memref<1x256xf32, #tpu.memory_space<vmem>>, %arg4: memref<1x1x256xf32, #tpu.memory_space<vmem>>) attributes {dimension_semantics = [#tpu.dimension_semantics<parallel>, #tpu.dimension_semantics<parallel>], iteration_bounds = array<i64: 1, 2>, scalar_prefetch = 0 : i64, scratch_operands = 0 : i64, tpu.core_type = #tpu.core_type<tc>, window_params = [{transform_indices = @transform_0, window_bounds = array<i64: 1, 1, 256>}, {transform_indices = @transform_1, window_bounds = array<i64: 1, 256>}, {transform_indices = @transform_2, window_bounds = array<i64: 1, 1, 256>}]} {
    %c0 = arith.constant 0 : index
    %c0_0 = arith.constant 0 : index
    %c0_1 = arith.constant 0 : index
    %0 = vector.load %arg2[%c0, %c0_0, %c0_1] : memref<1x1x256xf32, #tpu.memory_space<vmem>>, vector<1x1x256xf32>
    %1 = vector.shape_cast %0 : vector<1x1x256xf32> to vector<1x256xf32>
    %cst = arith.constant 5.65685415 : f32
    %2 = vector.broadcast %cst : f32 to vector<1x256xf32>
    %3 = arith.mulf %1, %2 : vector<1x256xf32>
    %c0_2 = arith.constant 0 : index
    %c0_3 = arith.constant 0 : index
    %4 = vector.load %arg3[%c0_2, %c0_3] : memref<1x256xf32, #tpu.memory_space<vmem>>, vector<1x256xf32>
    %5 = arith.addf %3, %4 : vector<1x256xf32>
    %c0_4 = arith.constant 0 : index
    %c0_5 = arith.constant 0 : index
    %c0_6 = arith.constant 0 : index
    %6 = vector.load %arg4[%c0_4, %c0_5, %c0_6] : memref<1x1x256xf32, #tpu.memory_space<vmem>>, vector<1x1x256xf32>
    %7 = vector.shape_cast %6 : vector<1x1x256xf32> to vector<1x256xf32>
    %8 = vector.shape_cast %5 : vector<1x256xf32> to vector<1x1x256xf32>
    tpu.vector_store %arg4[%c0_4, %c0_5, %c0_6], %8 {strides = array<i32>} : memref<1x1x256xf32, #tpu.memory_space<vmem>>, vector<1x1x256xf32>,
    return
  }
  func.func @transform_0(%arg0: i32, %arg1: i32) -> (i32, i32, i32) {
    %c0_i32 = arith.constant 0 : i32
    %c0_i32_0 = arith.constant 0 : i32
    return %arg1, %arg0, %c0_i32 : i32, i32, i32
  }
  func.func @transform_1(%arg0: i32, %arg1: i32) -> (i32, i32) {
    %c0_i32 = arith.constant 0 : i32
    %c0_i32_0 = arith.constant 0 : i32
    return %arg0, %c0_i32 : i32, i32
  }
  func.func @transform_2(%arg0: i32, %arg1: i32) -> (i32, i32, i32) {
    %c0_i32 = arith.constant 0 : i32
    %c0_i32_0 = arith.constant 0 : i32
    return %arg1, %arg0, %c0_i32 : i32, i32, i32
  }
}

</mosaic_0001>

<bundles_post_ra>
// kernel: tpu_custom_call.1
= control target key start
LH: loop header
LB: loop body
LE: loop exit
PB: predicated region body
PF: predicated region fallthrough
CT: control target
= control target key end

     0   :  { %7 = vsyncpa [#allocation3], 0  ;;  %s706_s0 = inlined_call_operand.hbm [shape: f32[2,1,256], index: 0, kind: input, shape index: {}]   ;;  %s707_s1 = inlined_call_operand.vmem [shape: f32[1,256], index: 1, kind: input, shape index: {}]   ;;  %s708_s2 = inlined_call_operand.hbm [shape: f32[2,1,256], index: 2, kind: output, shape index: {}]  }
   0x1   :  { %9 = vsyncpa [#allocation3 + $0x1], 0 }
   0x2   :  { %10 = vsyncpa [#allocation4], 0 }
   0x3   :  { %12 = vsyncpa [#allocation4 + $0x1], 0  ;;  %s531_s9 = smov 0   ;;  %s533_s10 = smov 0  }
   0x4   :  { %s535_s11 = smov 0   ;;  %s537_s12 = smov 0  }
   0x5   :  { %s539_s13 = smov 0   ;;  %s541_s14 = smov 0  }
   0x6 LB: > { %s320_s15 = sadd.s32 4294967295, %s512_s14   ;;  %s321_s16 = sadd.s32 4294967294, %s512_s14   ;;  %s512_s14 = sphi %s541_s14, %s18_s14   ;;  %s508_s13 = sphi %s539_s13, %s724_s13   ;;  %s504_s12 = sphi %s537_s12, %s723_s12   ;;  %s500_s11 = sphi %s535_s11, %s722_s11   ;;  %s496_s10 = sphi %s533_s10, %s721_s10   ;;  %s492_s9 = sphi %s531_s9, %s720_s9  }
   0x7   : > { %s27_s17 = sadd.s32 1, %s508_s13  ;;  %s39_s18 = sadd.s32 1, %s500_s11 }
   0x8   : > { %p28_p0 = scmp.ge.s32.totalorder %s27_s17, 2  ;;  %p46_p1 = scmp.ne.s32.totalorder %s500_s11, %s496_s10 }
   0x9   : > { %p47_p2 = scmp.eq.s32.totalorder %s512_s14, 0  ;;  %p52_p3 = scmp.ne.s32.totalorder %s496_s10, %s492_s9 }
   0xa   : > { %s726_s17 = smov (%p28_p0, %s27_s17), 0  ;;  %p53_p5 = scmp.eq.s32.totalorder %s320_s15, 0 }
   0xb   : > { %p572_p4 = por %p47_p2, %p46_p1  ;;  %s34_s20 = ssub.s32 %s508_s13, %s726_s17 }
   0xc   : > { %p104_p6 = scmp.eq.s32.totalorder %s320_s15, 1  ;;  %p37_p7 = scmp.eq.s32.totalorder %s34_s20, 0 }
   0xd   : > { %p578_p8 = por %p53_p5, %p52_p3  ;;  %p110_p10 = scmp.eq.s32.totalorder %s321_s16, 1 }
   0xe   : > { %p582_p9 = por %p104_p6, %p46_p1  ;;  %p350_p13 = scmp.lt.s32.totalorder %s512_s14, 2 }
   0xf   : > { %s587_s23 = scalar_select %p37_p7, %s500_s11, %s39_s18  }
  0x10   : > { %s712_s22 = scalar_select %p582_p9, 1, 0 }
  0x11   : > { %p589_p11 = por %p110_p10, %p52_p3  ;;  %s137_s25 = sand.u32 1, %s500_s11  }
  0x12   : > { %s325_s26 = sshll.u32 %s137_s25, 1  ;;  %s336_s27 = sshll.u32 %s508_s13, 5 }
  0x13   : > { %s713_s24 = scalar_select %p589_p11, 1, 0 }
  0x14   : > { %s600_s30 = scalar_lea.hbm %s706_s0, %s336_s27  ;;  %s141_s3 = scalar_lea.vmem [#allocation2], %s325_s26 }
  0x15   : > { %s151_s4 = sshll.u32 %s141_s3, 4  ;;  %p606_p0 = pnand %p350_p13, %p572_p4  ;;  %s602_s4 = int_to_ptr.vmem [resolvable:$true] %s151_s4 }
  0x16   : > { %s138_s6 = scalar_lea.sflag [#allocation3], %s137_s25  ;;  %s400_s7 = scalar_lea.hbm %s600_s30, 32 }
  0x17   : > { %p401_p3 = scmp.ne.s32.totalorder %s600_s30, %s400_s7  ;;  %p402_p5 = pneg %p606_p0 }
  0x18   : > { %s405_s16 = scalar_lea.hbm %s706_s0, 64  ;;  %p406_p4 = scmp.lt.u32.totalorder %s600_s30, %s706_s0 }
  0x19   : > { %p403_p6 = pnand %p402_p5, %p401_p3  ;;  %p407_p10 = scmp.lt.u32.totalorder %s405_s16, %s400_s7 }
  0x1a   : > { %p409_p12 = scmp.lt.u32.totalorder %s400_s7, %s600_s30 }
  0x1b   : > { %p404_p7 = pneg %p403_p6  ;;  %p408_p13 = por %p407_p10, %p406_p4 }
  0x1d   : > { %p410_p1 = por %p409_p12, %p408_p13 }
  0x1f   : > { %p411_p2 = pnand %p410_p1, %p404_p7 }
  0x21   : > { %414 = shalt.err (!%p411_p2)
}
  0x22   : > { %s415_s20 = scalar_lea.vmem %s602_s4, 32  ;;  %s514_s25 = smov [#allocation2]  }
  0x23   : > { %p416_p3 = scmp.ne.s32.totalorder %s602_s4, %s415_s20  ;;  %s420_s26 = sshll.u32 %s514_s25, 4  ;;  %s421_s26 = int_to_ptr.vmem [resolvable:$false] %s420_s26 }
  0x24   : > { %s422_s27 = scalar_lea.vmem %s421_s26, 64  ;;  %p423_p9 = scmp.lt.s32.totalorder %s602_s4, %s421_s26 }
  0x25   : > { %p418_p6 = pnand %p416_p3, %p402_p5  ;;  %p424_p4 = scmp.lt.s32.totalorder %s422_s27, %s415_s20 }
  0x27   : > { %p419_p11 = pneg %p418_p6  ;;  %p425_p10 = por %p424_p4, %p423_p9 }
  0x29   : > { %p426_p12 = pnand %p425_p10, %p419_p11 }
  0x2b   : > { %429 = shalt.err (!%p426_p12)
}
  0x2c   : > { %345 = dma.hbm_to_vmem [thread:$0]  (!%p606_p0), %s600_s30, 32, %s602_s4, %s138_s6  }
  0x2d   : > { %p715_p1 = scmp.lt.s32.totalorder %s512_s14, 3  ;;  %p716_p2 = scmp.ge.s32.totalorder %s512_s14, 1 }
  0x2f   : > { %p157_p5 = pnand %p716_p2, %p715_p1 }
  0x30   : > { %s642_s28 = sand.u32 (!%p157_p5), 1, %s496_s10  }
  0x31   : > { %160 = sbr.rel (%p157_p5) target bundleno = 83 (0x53), region = 28  ;;  %s329_s29 = sshll.u32 (!%p157_p5), %s642_s28, 1 }
  0x32   : > { %s163_s3 = scalar_lea.sflag (!%p157_p5), [#allocation3], %s642_s28  ;;  %s166_s7 = scalar_lea.vmem (!%p157_p5), [#allocation2], %s329_s29 }
  0x38   : > { %483 = dma.done.wait (%p578_p8), %s163_s3, 32  }
  0x39   : > { %485 = vsyncadd (%p578_p8), %s163_s3, 4294967264  ;;  %v199_v0 = vlaneseq  ;;  %v195_v1 = vld [vmem:[%s166_s7] sm:$0x3]  ;;  %s190_s5 = scalar_lea.vmem [#allocation5], %s329_s29  ;;  %s337_s8 = sshll.u32 %s504_s12, 5 }
  0x3a   : > { %v197_v2 = vld [vmem:[%s707_s1] sm:$0x3]  ;;  %s221_s6 = sshll.u32 %s190_s5, 4  ;;  %v196_v3 = vmul.f32 5.656854, %v195_v1  ;;  %s659_s16 = scalar_lea.hbm %s708_s2, %s337_s8  ;;  %s654_s6 = int_to_ptr.vmem [resolvable:$true] %s221_s6 }
  0x3b   : > { %vm201_vm0 = vcmp.lt.s32.totalorder %v199_v0, 256  ;;  %s205_s18 = scalar_lea.sflag [#allocation4], %s642_s28  ;;  %s430_s19 = scalar_lea.vmem %s654_s6, 32 }
  0x3c   : > { %v198_v4 = vadd.f32 %v197_v2, %v196_v3  ;;  %p431_p8 = scmp.ne.s32.totalorder %s654_s6, %s430_s19  ;;  %p717_p9 = scmp.ne.s32.totalorder %s712_s22, 0 }
  0x3d   : > { %s515_s12 = smov [#allocation5]  }
  0x3e   : > { %203 = vst.msk [vmem:[%s190_s5] sm:$0x3] %vm201_vm0, %v198_v4  ;;  %p432_p11 = pnand %p431_p8, %p717_p9  ;;  %s434_s20 = sshll.u32 %s515_s12, 4  ;;  %s435_s20 = int_to_ptr.vmem [resolvable:$false] %s434_s20 }
  0x3f   : > { %s436_s25 = scalar_lea.vmem %s435_s20, 64  ;;  %p437_p7 = scmp.lt.s32.totalorder %s654_s6, %s435_s20 }
  0x40   : > { %p433_p0 = pneg %p432_p11  ;;  %p438_p13 = scmp.lt.s32.totalorder %s436_s25, %s430_s19 }
  0x42   : > { %p439_p3 = por %p438_p13, %p437_p7 }
  0x44   : > { %p440_p6 = pnand %p439_p3, %p433_p0 }
  0x46   : > { %443 = shalt.err (!%p440_p6)
}
  0x47   : > { %s444_s26 = scalar_lea.hbm %s659_s16, 32  ;;  %s448_s29 = scalar_lea.hbm %s708_s2, 64 }
  0x48   : > { %p445_p4 = scmp.ne.s32.totalorder %s659_s16, %s444_s26  ;;  %p449_p1 = scmp.lt.u32.totalorder %s659_s16, %s708_s2 }
  0x49   : > { %p450_p2 = scmp.lt.u32.totalorder %s448_s29, %s444_s26  ;;  %p452_p8 = scmp.lt.u32.totalorder %s444_s26, %s659_s16 }
  0x4a   : > { %p446_p10 = pnand %p445_p4, %p717_p9 }
  0x4b   : > { %p451_p5 = por %p450_p2, %p449_p1 }
  0x4c   : > { %p447_p12 = pneg %p446_p10 }
  0x4d   : > { %p453_p11 = por %p452_p8, %p451_p5 }
  0x4f   : > { %p454_p0 = pnand %p453_p11, %p447_p12 }
  0x51   : > { %457 = shalt.err (!%p454_p0)
}
  0x52   : > { %340 = dma.vmem_to_hbm [thread:$0]  (%p717_p9), %s654_s6, 32, %s659_s16, %s205_s18  }
  0x53 PF: > { %s233_s30 = sand.u32 1, %s492_s9   ;;  %p718_p7 = scmp.ne.s32.totalorder %s713_s24, 0 }
  0x54   : > { %p719_p13 = scmp.ge.s32.totalorder %s512_s14, 2  ;;  %s234_s4 = scalar_lea.sflag [#allocation4], %s233_s30 }
  0x56   : > { %p347_p3 = pnand %p719_p13, %p718_p7 }
  0x58   : > { %487 = dma.done.wait (!%p347_p3), %s234_s4, 32  }
  0x59   : > { %489 = vsyncadd (!%p347_p3), %s234_s4, 4294967264  ;;  %s18_s14 = sadd.s32 1, %s512_s14   ;;  %s720_s9 = smov %s496_s10 }
  0x5a   : > { %p15_p6 = scmp.ge.s32.totalorder %s18_s14, 4   ;;  %s721_s10 = smov %s500_s11 }
  0x5b   : > { %s722_s11 = smov %s587_s23  ;;  %s723_s12 = smov %s508_s13 }
  0x5c   : > { %s724_s13 = smov %s726_s17  ;;  %17 = sbr.rel (!%p15_p6) target bundleno = 6 (0x6), region = 76 }
  0x63   :  { %239 = vsyncpa [#allocation3], 1 }
  0x64   :  { %241 = vsyncpa [#allocation3 + $0x1], 1 }
  0x65   :  { %242 = vsyncpa [#allocation4], 1 }
  0x66   :  { %244 = vsyncpa [#allocation4 + $0x1], 1 }

</bundles_post_ra>
